<compile_context>
chip_gen: v5e
topology: v5e:2x2
jax: 0.10.0
libtpu: 0.0.40
codegen_flags: <defaults>
</compile_context>

<pallas_src>
import jax
import jax.numpy as jnp
from jax.experimental import pallas as pl
from jax.experimental.pallas import tpu as pltpu


def _round_up(n: int, m: int) -> int:
    return ((n + m - 1) // m) * m


def dqn_kernel(x_ref, w1_ref, b1_ref, w2_ref, b2_ref, w3_ref, b3_ref, o_ref):
    """One (TB, in_dim) batch tile through the full 3-layer MLP."""
    # In-kernel operand cast: x is read from HBM in its original dtype and
    # cast to the weight dtype here (halves x-side HBM traffic vs a
    # wrapper-side astype when the compute dtype is bf16).
    x = x_ref[...].astype(w1_ref.dtype)

    # Layer 1: Linear + ReLU (MXU matmul, f32 accumulate; bias/ReLU in f32).
    h1 = jnp.dot(x, w1_ref[...], preferred_element_type=jnp.float32)
    h1 = jnp.maximum(h1 + b1_ref[...], 0.0)

    # Layer 2: Linear + ReLU (cast activations to the weight dtype so the MXU
    # sees bf16 operands on the bf16 path; no-op for f32).
    h2 = jnp.dot(h1.astype(w2_ref.dtype), w2_ref[...],
                 preferred_element_type=jnp.float32)
    h2 = jnp.maximum(h2 + b2_ref[...], 0.0)

    # Layer 3: Linear (no activation). Output block spans the full (small)
    # feature dim, so the store is unpadded in lanes.
    out = jnp.dot(h2.astype(w3_ref.dtype), w3_ref[...],
                  preferred_element_type=jnp.float32)
    o_ref[...] = (out + b3_ref[...]).astype(o_ref.dtype)


def prepare_params(params, compute_dtype=jnp.bfloat16):
    """One-time parameter prep (do NOT call per forward pass).

    Weights -> compute_dtype (MXU operands), biases -> f32 (VPU math).
    """
    return dict(
        w1=params["w1"].astype(compute_dtype),
        b1=params["b1"].astype(jnp.float32),
        w2=params["w2"].astype(compute_dtype),
        b2=params["b2"].astype(jnp.float32),
        w3=params["w3"].astype(compute_dtype),
        b3=params["b3"].astype(jnp.float32),
    )


def dqn_forward(x, params, *, block_b: int = 2048):
    """x: (B, input_dim). params: output of prepare_params (or f32 params)."""
    w1, b1, w2, b2, w3, b3 = (params[k] for k in ("w1", "b1", "w2", "b2",
                                                  "w3", "b3"))
    B, in_dim = x.shape
    hidden = w1.shape[1]
    out_dim = w3.shape[1]
    compute_dtype = w1.dtype

    # --- Batch tiling -------------------------------------------------------
    # Sublane-align rows: 16 for sub-32-bit compute dtypes (bf16 packs two
    # rows per sublane), 8 for f32.
    sub = 16 if jnp.dtype(compute_dtype).itemsize < 4 else 8
    b_min = _round_up(B, sub)
    nt = -(-b_min // min(block_b, b_min))        # ceil-div: number of tiles
    # v7x has 2 TensorCores: keep >= 2 grid steps whenever the batch allows
    # two sublane-aligned tiles so the grid never collapses to (1,).
    if nt < 2 and b_min >= 2 * sub:
        nt = 2
    tb = _round_up(-(-b_min // nt), sub)         # balanced, aligned tile
    b_pad = nt * tb
    if b_pad != B:
        x = jnp.pad(x, ((0, b_pad - B), (0, 0)))

    # --- BlockSpecs ---------------------------------------------------------
    # x / out stream per grid step; weights & biases stay resident in VMEM.
    x_spec = pl.BlockSpec((tb, in_dim), lambda i: (i, 0))
    out_spec = pl.BlockSpec((tb, out_dim), lambda i: (i, 0))

    def resident(arr):
        return pl.BlockSpec(arr.shape, lambda i: (0, 0))

    operands = (x, w1, b1, w2, b2, w3, b3)

    flops = 2 * b_pad * (in_dim * hidden + hidden * hidden + hidden * out_dim)
    bytes_accessed = (sum(int(a.size) * a.dtype.itemsize for a in operands)
                      + b_pad * out_dim * 4)
    cost = pl.CostEstimate(flops=flops, transcendentals=0,
                           bytes_accessed=bytes_accessed)

    out = pl.pallas_call(
        dqn_kernel,
        out_shape=jax.ShapeDtypeStruct((b_pad, out_dim), jnp.float32),
        grid=(nt,),
        in_specs=[x_spec] + [resident(a) for a in operands[1:]],
        out_specs=out_spec,
        compiler_params=pltpu.CompilerParams(
            dimension_semantics=("parallel",)),
        cost_estimate=cost,
    )(*operands)

    # Only slice when the batch actually had to be padded.
    return out if b_pad == B else out[:B]


def init_params(key, input_dim, output_dim, hidden_size=128):
    """Deterministic synthetic init (roughly PyTorch Linear's fan-in scale)."""
    ks = jax.random.split(key, 6)

    def lin(kw, kb, fan_in, fan_out):
        bound = 1.0 / jnp.sqrt(fan_in)
        w = jax.random.uniform(kw, (fan_in, fan_out), jnp.float32, -bound, bound)
        b = jax.random.uniform(kb, (1, fan_out), jnp.float32, -bound, bound)
        return w, b

    w1, b1 = lin(ks[0], ks[1], input_dim, hidden_size)
    w2, b2 = lin(ks[2], ks[3], hidden_size, hidden_size)
    w3, b3 = lin(ks[4], ks[5], hidden_size, output_dim)
    return dict(w1=w1, b1=b1, w2=w2, b2=b2, w3=w3, b3=b3)


def dqn_forward_ref(x, p):
    h1 = jnp.maximum(x @ p["w1"] + p["b1"], 0.0)
    h2 = jnp.maximum(h1 @ p["w2"] + p["b2"], 0.0)
    return h2 @ p["w3"] + p["b3"]


if __name__ == "__main__":
    key = jax.random.PRNGKey(0)
    k_x, k_p = jax.random.split(key)

    batch, input_dim, output_dim, hidden = 2, 8, 4, 128
    x = jax.random.normal(k_x, (batch, input_dim), jnp.float32)
    params = init_params(k_p, input_dim, output_dim, hidden)

    # One-time parameter prep (hoisted out of the per-call wrapper).
    params_f32 = prepare_params(params, compute_dtype=jnp.float32)
    params_bf16 = prepare_params(params)        # default bf16 MXU operands

    ref = dqn_forward_ref(x, params)

    # f32 path: exact-ish match against the pure-JAX reference (grid=(1,)).
    out_f32 = jax.block_until_ready(dqn_forward(x, params_f32))
    assert out_f32.shape == (batch, output_dim)
    assert jnp.allclose(out_f32, ref, atol=1e-5, rtol=1e-5)

    # bf16 matmul-operand path (v5e/v6e/v7x MXU-native): looser tolerance.
    out_bf16 = jax.block_until_ready(dqn_forward(x, params_bf16))
    assert out_bf16.shape == (batch, output_dim)
    assert jnp.allclose(out_bf16, ref, atol=5e-2, rtol=5e-2)

    # Larger batch: exercises the multi-step grid (>= 2 steps so both v7x
    # TensorCores get work) with no batch padding and no post-kernel slice.
    big_b = 1024
    xb = jax.random.normal(k_x, (big_b, input_dim), jnp.float32)
    ref_big = dqn_forward_ref(xb, params)

    out_big_f32 = jax.block_until_ready(dqn_forward(xb, params_f32))
    assert out_big_f32.shape == (big_b, output_dim)
    assert jnp.allclose(out_big_f32, ref_big, atol=1e-5, rtol=1e-5)

    out_big_bf16 = jax.block_until_ready(dqn_forward(xb, params_bf16))
    assert out_big_bf16.shape == (big_b, output_dim)
    assert jnp.allclose(out_big_bf16, ref_big, atol=1e-1, rtol=1e-1)

    # TODO(synk): optionally fuse the DQN consumer (argmax/gather over the 4
    # actions) into the kernel so only a (B,) result leaves HBM.
    print("KERNEL_OK")
</pallas_src>

<mosaic_0001>
module attributes {stable_mosaic.version = 11 : i64} {
  func.func @dqn_kernel(%arg0: i32, %arg1: memref<8x8xf32, #tpu.memory_space<vmem>>, %arg2: memref<8x128xf32, #tpu.memory_space<vmem>>, %arg3: memref<1x128xf32, #tpu.memory_space<vmem>>, %arg4: memref<128x128xf32, #tpu.memory_space<vmem>>, %arg5: memref<1x128xf32, #tpu.memory_space<vmem>>, %arg6: memref<128x4xf32, #tpu.memory_space<vmem>>, %arg7: memref<1x4xf32, #tpu.memory_space<vmem>>, %arg8: memref<8x4xf32, #tpu.memory_space<vmem>>) attributes {dimension_semantics = [#tpu.dimension_semantics<parallel>], iteration_bounds = array<i64: 1>, scalar_prefetch = 0 : i64, scratch_operands = 0 : i64, tpu.core_type = #tpu.core_type<tc>, window_params = [{transform_indices = @transform_0, window_bounds = array<i64: 8, 8>}, {pipeline_mode = #tpu.pipeline_mode<synchronous>, transform_indices = @transform_1, window_bounds = array<i64: 8, 128>}, {pipeline_mode = #tpu.pipeline_mode<synchronous>, transform_indices = @transform_2, window_bounds = array<i64: 1, 128>}, {pipeline_mode = #tpu.pipeline_mode<synchronous>, transform_indices = @transform_3, window_bounds = array<i64: 128, 128>}, {pipeline_mode = #tpu.pipeline_mode<synchronous>, transform_indices = @transform_4, window_bounds = array<i64: 1, 128>}, {pipeline_mode = #tpu.pipeline_mode<synchronous>, transform_indices = @transform_5, window_bounds = array<i64: 128, 4>}, {pipeline_mode = #tpu.pipeline_mode<synchronous>, transform_indices = @transform_6, window_bounds = array<i64: 1, 4>}, {transform_indices = @transform_7, window_bounds = array<i64: 8, 4>}]} {
    %c0 = arith.constant 0 : index
    %c0_0 = arith.constant 0 : index
    %0 = vector.load %arg1[%c0, %c0_0] : memref<8x8xf32, #tpu.memory_space<vmem>>, vector<8x8xf32>
    %c0_1 = arith.constant 0 : index
    %c0_2 = arith.constant 0 : index
    %1 = vector.load %arg2[%c0_1, %c0_2] : memref<8x128xf32, #tpu.memory_space<vmem>>, vector<8x128xf32>
    %cst = arith.constant dense<0.000000e+00> : vector<8x128xf32>
    %2 = tpu.matmul %0, %1, %cst {dimension_numbers = #tpu.dot_dimension_numbers<[1], [0], [0], [1], [0, 0, 1, 1], [], []>} : vector<8x8xf32>, vector<8x128xf32>, vector<8x128xf32> -> vector<8x128xf32>
    %c0_3 = arith.constant 0 : index
    %c0_4 = arith.constant 0 : index
    %3 = vector.load %arg3[%c0_3, %c0_4] : memref<1x128xf32, #tpu.memory_space<vmem>>, vector<1x128xf32>
    %4 = vector.broadcast %3 : vector<1x128xf32> to vector<8x128xf32>
    %5 = arith.addf %2, %4 : vector<8x128xf32>
    %cst_5 = arith.constant 0.000000e+00 : f32
    %6 = vector.broadcast %cst_5 : f32 to vector<8x128xf32>
    %7 = arith.maximumf %5, %6 : vector<8x128xf32>
    %c0_6 = arith.constant 0 : index
    %c0_7 = arith.constant 0 : index
    %8 = vector.load %arg4[%c0_6, %c0_7] : memref<128x128xf32, #tpu.memory_space<vmem>>, vector<128x128xf32>
    %cst_8 = arith.constant dense<0.000000e+00> : vector<8x128xf32>
    %9 = tpu.matmul %7, %8, %cst_8 {dimension_numbers = #tpu.dot_dimension_numbers<[1], [0], [0], [1], [0, 0, 1, 1], [], []>} : vector<8x128xf32>, vector<128x128xf32>, vector<8x128xf32> -> vector<8x128xf32>
    %c0_9 = arith.constant 0 : index
    %c0_10 = arith.constant 0 : index
    %10 = vector.load %arg5[%c0_9, %c0_10] : memref<1x128xf32, #tpu.memory_space<vmem>>, vector<1x128xf32>
    %11 = vector.broadcast %10 : vector<1x128xf32> to vector<8x128xf32>
    %12 = arith.addf %9, %11 : vector<8x128xf32>
    %cst_11 = arith.constant 0.000000e+00 : f32
    %13 = vector.broadcast %cst_11 : f32 to vector<8x128xf32>
    %14 = arith.maximumf %12, %13 : vector<8x128xf32>
    %c0_12 = arith.constant 0 : index
    %c0_13 = arith.constant 0 : index
    %15 = vector.load %arg6[%c0_12, %c0_13] : memref<128x4xf32, #tpu.memory_space<vmem>>, vector<128x4xf32>
    %cst_14 = arith.constant dense<0.000000e+00> : vector<8x4xf32>
    %16 = tpu.matmul %14, %15, %cst_14 {dimension_numbers = #tpu.dot_dimension_numbers<[1], [0], [0], [1], [0, 0, 1, 1], [], []>} : vector<8x128xf32>, vector<128x4xf32>, vector<8x4xf32> -> vector<8x4xf32>
    %c0_15 = arith.constant 0 : index
    %c0_16 = arith.constant 0 : index
    %17 = vector.load %arg7[%c0_15, %c0_16] : memref<1x4xf32, #tpu.memory_space<vmem>>, vector<1x4xf32>
    %18 = vector.broadcast %17 : vector<1x4xf32> to vector<8x4xf32>
    %19 = arith.addf %16, %18 : vector<8x4xf32>
    %c0_17 = arith.constant 0 : index
    %c0_18 = arith.constant 0 : index
    %20 = vector.load %arg8[%c0_17, %c0_18] : memref<8x4xf32, #tpu.memory_space<vmem>>, vector<8x4xf32>
    tpu.vector_store %arg8[%c0_17, %c0_18], %19 {strides = array<i32>} : memref<8x4xf32, #tpu.memory_space<vmem>>, vector<8x4xf32>,
    return
  }
  func.func @transform_0(%arg0: i32) -> (i32, i32) {
    %c0_i32 = arith.constant 0 : i32
    %c0_i32_0 = arith.constant 0 : i32
    return %arg0, %c0_i32 : i32, i32
  }
  func.func @transform_1(%arg0: i32) -> (i32, i32) {
    %c0_i32 = arith.constant 0 : i32
    %c0_i32_0 = arith.constant 0 : i32
    %c0_i32_1 = arith.constant 0 : i32
    return %c0_i32, %c0_i32_0 : i32, i32
  }
  func.func @transform_2(%arg0: i32) -> (i32, i32) {
    %c0_i32 = arith.constant 0 : i32
    %c0_i32_0 = arith.constant 0 : i32
    %c0_i32_1 = arith.constant 0 : i32
    return %c0_i32, %c0_i32_0 : i32, i32
  }
  func.func @transform_3(%arg0: i32) -> (i32, i32) {
    %c0_i32 = arith.constant 0 : i32
    %c0_i32_0 = arith.constant 0 : i32
    %c0_i32_1 = arith.constant 0 : i32
    return %c0_i32, %c0_i32_0 : i32, i32
  }
  func.func @transform_4(%arg0: i32) -> (i32, i32) {
    %c0_i32 = arith.constant 0 : i32
    %c0_i32_0 = arith.constant 0 : i32
    %c0_i32_1 = arith.constant 0 : i32
    return %c0_i32, %c0_i32_0 : i32, i32
  }
  func.func @transform_5(%arg0: i32) -> (i32, i32) {
    %c0_i32 = arith.constant 0 : i32
    %c0_i32_0 = arith.constant 0 : i32
    %c0_i32_1 = arith.constant 0 : i32
    return %c0_i32, %c0_i32_0 : i32, i32
  }
  func.func @transform_6(%arg0: i32) -> (i32, i32) {
    %c0_i32 = arith.constant 0 : i32
    %c0_i32_0 = arith.constant 0 : i32
    %c0_i32_1 = arith.constant 0 : i32
    return %c0_i32, %c0_i32_0 : i32, i32
  }
  func.func @transform_7(%arg0: i32) -> (i32, i32) {
    %c0_i32 = arith.constant 0 : i32
    %c0_i32_0 = arith.constant 0 : i32
    return %arg0, %c0_i32 : i32, i32
  }
}

</mosaic_0001>

<bundles_post_ra>
// kernel: tpu_custom_call.1
= control target key start
LH: loop header
LB: loop body
LE: loop exit
PB: predicated region body
PF: predicated region fallthrough
CT: control target
= control target key end

     0   :  { %12 = vsyncpa [#allocation3], 0  ;;  %s388_s0 = inlined_call_operand.hbm [shape: f32[8,8], index: 0, kind: input, shape index: {}]   ;;  %s389_s1 = inlined_call_operand.hbm [shape: f32[8,128], index: 1, kind: input, shape index: {}]   ;;  %s390_s2 = inlined_call_operand.vmem [shape: f32[1,128], index: 2, kind: input, shape index: {}]   ;;  %s391_s3 = inlined_call_operand.vmem [shape: f32[128,128], index: 3, kind: input, shape index: {}]   ;;  %s392_s4 = inlined_call_operand.vmem [shape: f32[1,128], index: 4, kind: input, shape index: {}]   ;;  %s393_s5 = inlined_call_operand.vmem [shape: f32[128,4], index: 5, kind: input, shape index: {}]   ;;  %s394_s6 = inlined_call_operand.vmem [shape: f32[1,4], index: 6, kind: input, shape index: {}]   ;;  %s395_s7 = inlined_call_operand.vmem [shape: f32[8,4], index: 7, kind: output, shape index: {}]  }
   0x1   :  { %s19_s26 = sshll.u32 %s388_s0, 4  ;;  %s20_s26 = int_to_ptr.hbm [resolvable:$true] %s19_s26 }
   0x2   :  { %13 = vsyncpa [#allocation5], 0  ;;  %s232_s27 = smov [#allocation2]   ;;  %s30_s8 = sshll.u32 %s389_s1, 4  ;;  %s31_s8 = int_to_ptr.hbm [resolvable:$true] %s30_s8 }
   0x3   :  { %s21_s28 = sshll.u32 %s232_s27, 4  ;;  %s233_s9 = smov [#allocation4]   ;;  %s22_s28 = int_to_ptr.vmem [resolvable:$true] %s21_s28 }
   0x4   :  { %24 = dma.hbm_to_vmem [thread:$0]  %s20_s26, 128, %s22_s28, [#allocation3]  }
   0x5   :  { %s32_s10 = sshll.u32 %s233_s9, 4  ;;  %s33_s10 = int_to_ptr.vmem [resolvable:$true] %s32_s10 }
   0x6   :  { %35 = dma.hbm_to_vmem [thread:$0]  %s31_s8, 128, %s33_s10, [#allocation5]  }
   0x7   :  { %228 = dma.done.wait [#allocation3], 128  }
   0x8   :  { %229 = vsyncadd [#allocation3], 4294967168 }
   0x9   :  { %230 = dma.done.wait [#allocation5], 128  }
   0xa   :  { %231 = vsyncadd [#allocation5], 4294967168  ;;  %vm60_vm0 = vcmask 64512   ;;  %v55_v0 = vld [vmem:[#allocation4] sm:$0xff]  ;;  %v54_v1 = vld [vmem:[#allocation2] sm:$0xff]  ;;  %vm166_vm1 = vcmask 31744  }
   0xb   :  { %v100_v2 = vld [vmem:[%s391_s3 + $0x78] sm:$0xff]  ;;  %79 = vmatpush.msra.mxu0 %v55_v0  ;;  %v99_v3 = vld [vmem:[%s391_s3 + $0x70] sm:$0xff]  ;;  %v98_v4 = vld [vmem:[%s391_s3 + $0x68] sm:$0xff] }
   0xc   :  { %105 = vmatpush.msra.mxu1 %v100_v2  ;;  %174 = vmatmul.msk.f32.vlgmr.msra.gmra.mxu0 %vm60_vm0, %v54_v1  ;;  %v97_v5 = vld [vmem:[%s391_s3 + $0x60] sm:$0xff]  ;;  %v96_v6 = vld [vmem:[%s391_s3 + $0x58] sm:$0xff]  ;;  %v95_v7 = vld [vmem:[%s391_s3 + $0x50] sm:$0xff] }
   0xd   :  { %v94_v8 = vld [vmem:[%s391_s3 + $0x48] sm:$0xff]  ;;  %v93_v9 = vld [vmem:[%s391_s3 + $0x40] sm:$0xff]  ;;  %v92_v10 = vld [vmem:[%s391_s3 + $0x38] sm:$0xff] }
   0xe   :  { %106 = vmatpush.msra.mxu1 %v99_v3  ;;  %v91_v11 = vld [vmem:[%s391_s3 + $0x30] sm:$0xff]  ;;  %v90_v12 = vld [vmem:[%s391_s3 + $0x28] sm:$0xff]  ;;  %v89_v13 = vld [vmem:[%s391_s3 + $0x20] sm:$0xff] }
   0xf   :  { %v88_v14 = vld [vmem:[%s391_s3 + $0x18] sm:$0xff]  ;;  %v87_v15 = vld [vmem:[%s391_s3 + $0x10] sm:$0xff]  ;;  %v86_v16 = vld [vmem:[%s391_s3 + $0x8] sm:$0xff] }
  0x10   :  { %107 = vmatpush.msra.mxu1 %v98_v4  ;;  %v85_v17 = vld [vmem:[%s391_s3] sm:$0xff]  ;;  %v141_v18 = vld [vmem:[%s393_s5 + $0x78] sm:$0xff]  ;;  %v140_v19 = vld [vmem:[%s393_s5 + $0x70] sm:$0xff] }
  0x11   :  { %146 = vmatpush.msra.mxu2 %v141_v18  ;;  %v139_v20 = vld [vmem:[%s393_s5 + $0x68] sm:$0xff]  ;;  %v138_v21 = vld [vmem:[%s393_s5 + $0x60] sm:$0xff]  ;;  %v137_v22 = vld [vmem:[%s393_s5 + $0x58] sm:$0xff] }
  0x12   :  { %108 = vmatpush.msra.mxu1 %v97_v5  ;;  %v136_v23 = vld [vmem:[%s393_s5 + $0x50] sm:$0xff]  ;;  %v135_v24 = vld [vmem:[%s393_s5 + $0x48] sm:$0xff]  ;;  %v134_v25 = vld [vmem:[%s393_s5 + $0x40] sm:$0xff] }
  0x13   :  { %147 = vmatpush.msra.mxu2 %v140_v19  ;;  %v133_v26 = vld [vmem:[%s393_s5 + $0x38] sm:$0xff]  ;;  %v132_v27 = vld [vmem:[%s393_s5 + $0x30] sm:$0xff]  ;;  %v131_v28 = vld [vmem:[%s393_s5 + $0x28] sm:$0xff] }
  0x14   :  { %109 = vmatpush.msra.mxu1 %v96_v6  ;;  %v130_v29 = vld [vmem:[%s393_s5 + $0x20] sm:$0xff]  ;;  %v129_v30 = vld [vmem:[%s393_s5 + $0x18] sm:$0xff]  ;;  %v128_v35 = vld [vmem:[%s393_s5 + $0x10] sm:$0xff] }
  0x15   :  { %148 = vmatpush.msra.mxu2 %v139_v20  ;;  %v177_v31 = vld [vmem:[%s390_s2] ss:$0 sm:$0xff]  ;;  %v127_v36 = vld [vmem:[%s393_s5 + $0x8] sm:$0xff] }
  0x16   :  { %110 = vmatpush.msra.mxu1 %v95_v7  ;;  %v126_v37 = vld [vmem:[%s393_s5] sm:$0xff] }
  0x17   :  { %149 = vmatpush.msra.mxu2 %v138_v21  ;;  %v178_v38 = vld [vmem:[%s392_s4] ss:$0 sm:$0xff] }
  0x18   :  { %111 = vmatpush.msra.mxu1 %v94_v8  ;;  %v179_v42 = vld [vmem:[%s394_s6] ss:$0 sm:$0xff] }
  0x19   :  { %150 = vmatpush.msra.mxu2 %v137_v22 }
  0x1a   :  { %112 = vmatpush.msra.mxu1 %v93_v9 }
  0x1b   :  { %151 = vmatpush.msra.mxu2 %v136_v23 }
  0x1c   :  { %113 = vmatpush.msra.mxu1 %v92_v10 }
  0x1d   :  { %152 = vmatpush.msra.mxu2 %v135_v24 }
  0x1e   :  { %114 = vmatpush.msra.mxu1 %v91_v11 }
  0x1f   :  { %153 = vmatpush.msra.mxu2 %v134_v25 }
  0x20   :  { %115 = vmatpush.msra.mxu1 %v90_v12 }
  0x21   :  { %154 = vmatpush.msra.mxu2 %v133_v26 }
  0x22   :  { %116 = vmatpush.msra.mxu1 %v89_v13 }
  0x23   :  { %155 = vmatpush.msra.mxu2 %v132_v27 }
  0x24   :  { %117 = vmatpush.msra.mxu1 %v88_v14 }
  0x25   :  { %156 = vmatpush.msra.mxu2 %v131_v28 }
  0x26   :  { %118 = vmatpush.msra.mxu1 %v87_v15 }
  0x27   :  { %157 = vmatpush.msra.mxu2 %v130_v29 }
  0x28   :  { %119 = vmatpush.msra.mxu1 %v86_v16 }
  0x29   :  { %158 = vmatpush.msra.mxu2 %v129_v30 }
  0x2a   :  { %120 = vmatpush.msra.mxu1 %v85_v17 }
  0x2b   :  { %159 = vmatpush.msra.mxu2 %v128_v35 }
  0x2d   :  { %160 = vmatpush.msra.mxu2 %v127_v36 }
  0x2f   :  { %161 = vmatpush.msra.mxu2 %v126_v37 }
  0x89   :  { %v81_v32 = vpop.f32.mrf.mxu0 }
  0x8a   :  { %v82_v33 = vadd.f32 %v177_v31, %v81_v32 }
  0x8c   :  { %v84_v34 = vmax.f32 %v82_v33, 0.0 }
  0x8e   :  { %121 = vmatmul.f32.vlgmr.msra.gmra.mxu1 %v84_v34 }
 0x10b   :  { %v122_v39 = vpop.f32.mrf.mxu1 }
 0x10c   :  { %v123_v40 = vadd.f32 %v178_v38, %v122_v39 }
 0x10e   :  { %v125_v41 = vmax.f32 %v123_v40, 0.0 }
 0x110   :  { %162 = vmatmul.f32.vlgmr.msra.gmra.mxu2 %v125_v41 }
 0x193   :  { %v163_v43 = vpop.f32.mrf.mxu2 }
 0x194   :  { %v164_v44 = vadd.f32 %v179_v42, %v163_v43 }
 0x196   :  { %167 = vst.msk [vmem:[%s395_s7] sm:$0xff] %vm166_vm1, %v164_v44 }
 0x197   :  { %172 = vsyncpa [#allocation3], 1 }
 0x198   :  { %173 = vsyncpa [#allocation5], 1 }

</bundles_post_ra>
